<compile_context>
chip_gen: v5e
topology: v5e:2x2
jax: 0.10.0
libtpu: 0.0.40
codegen_flags: <defaults>
</compile_context>

<pallas_src>
import functools
import math

import jax
import jax.numpy as jnp
from jax.experimental import pallas as pl
from jax.experimental.pallas import tpu as pltpu

EPS = 1e-8      # module-level `eps` in the reference code
_NEG = -1e30    # "minus infinity" used to mask padded class columns


# ---------------------------------------------------------------------------
# Kernel 1: one-shot prototype pre-normalization (f32 (K, N, E) -> normalized
# bf16, same layout).  The cheap bf16 class-last transpose to (K, E, N) is
# layout plumbing done by XLA in the wrapper.
# ---------------------------------------------------------------------------
def _proto_norm_kernel(p_ref, o_ref, *, num_classes, class_tile):
    j = pl.program_id(1)
    p = p_ref[0]                                                  # (tile, E) f32
    inv = jax.lax.rsqrt(
        jnp.maximum(jnp.sum(p * p, axis=-1, keepdims=True), 1e-24))
    rows = jax.lax.broadcasted_iota(jnp.int32, p.shape, 0) + j * class_tile
    # zero any ragged pad rows so no Inf/NaN ever lands in the output buffer
    pn = jnp.where(rows < num_classes, p * inv, 0.0)
    o_ref[0] = pn.astype(jnp.bfloat16)


def _pick_prenorm_tile(num_classes, e):
    # keep double-buffered f32-in + bf16-out tiles well inside the default
    # scoped-VMEM limit (~12 bytes/element of the (tile, E) block)
    tile = max(8, (2 * 1024 * 1024) // max(e, 1))
    tile = (tile // 8) * 8
    return num_classes if num_classes <= tile else tile


def _normalize_prototypes(prototypes):
    """-> (K, E, N) bf16, row-normalized prototypes (class axis = lanes)."""
    K, N, E = prototypes.shape
    tile = _pick_prenorm_tile(N, E)
    n_blk = pl.cdiv(N, tile)
    out = pl.pallas_call(
        functools.partial(_proto_norm_kernel, num_classes=N, class_tile=tile),
        out_shape=jax.ShapeDtypeStruct((K, N, E), jnp.bfloat16),
        grid_spec=pltpu.PrefetchScalarGridSpec(
            num_scalar_prefetch=0,
            grid=(K, n_blk),
            in_specs=[pl.BlockSpec((1, tile, E), lambda k, j: (k, j, 0))],
            out_specs=pl.BlockSpec((1, tile, E), lambda k, j: (k, j, 0)),
        ),
        compiler_params=pltpu.CompilerParams(
            dimension_semantics=("parallel", "parallel")),
    )(prototypes.astype(jnp.float32))
    # TODO(synk): in a real training loop keep the parameter in (K, E, N) and
    # fold this normalization into the prototype update, so the loss kernel
    # streams pre-normalized bf16 rows with zero per-step prep.
    return jnp.swapaxes(out, 1, 2)                                # (K, E, N)


# ---------------------------------------------------------------------------
# Kernel 2: the ArcFace loss itself.  Grid = (class-range split, class tile).
# Per-split online-logsumexp partials (m, l, target-logit) live directly in
# the tiny resident output blocks and are combined in the wrapper.
# ---------------------------------------------------------------------------
def _arcface_kernel(emb_ref, proto_ref, labels_ref,
                    m_ref, l_ref, t_ref,
                    emb_n_sc,
                    *, s, cos_m, sin_m, add_m, k_subcenters, num_classes,
                    batch, class_tile, tiles_per_split):
    p = pl.program_id(0)            # class-range split (one per TC on v7x)
    j = pl.program_id(1)            # class tile within this split
    B, K, tn = batch, k_subcenters, class_tile
    t = p * tiles_per_split + j     # global class-tile index (may overhang)

    # ---- per-split init: normalize embeddings, reset partial accumulators ---
    @pl.when(j == 0)
    def _init():
        emb = emb_ref[...]                                        # (B, E) f32
        inv = jax.lax.rsqrt(
            jnp.maximum(jnp.sum(emb * emb, axis=-1, keepdims=True), 1e-24))
        emb_n_sc[...] = (emb * inv).astype(jnp.bfloat16)
        m_ref[0] = jnp.full((B, 1), _NEG, jnp.float32)
        l_ref[0] = jnp.zeros((B, 1), jnp.float32)
        t_ref[0] = jnp.zeros((B, 1), jnp.float32)

    # ---- cosines: one native (B,E)x(E,tn) MXU matmul per subcenter ----------
    emb_n = emb_n_sc[...]                                         # (B, E) bf16
    cos = []
    for k in range(K):                                            # K is tiny (2)
        cos.append(jax.lax.dot_general(
            emb_n, proto_ref[k],                                  # (E, tn) bf16
            dimension_numbers=(((1,), (0,)), ((), ())),
            preferred_element_type=jnp.float32))                  # (B, tn) f32
    cos0 = cos[0]
    cos_sum = cos0
    for k in range(1, K):
        cos_sum = cos_sum + cos[k]

    # ---- ArcFace margin (only subcenter 0 needed, see scatter_ quirk) -------
    sin0 = jnp.clip(jnp.sqrt(jnp.maximum(1.0 - cos0 * cos0, EPS)), EPS, 1.0 - EPS)
    phi0 = cos_m * cos0 - sin_m * sin0 - add_m

    # ---- masks rebuilt in-kernel from the B int32 labels --------------------
    labels = labels_ref[...]                                      # (B, 1) int32
    n_glob = jax.lax.broadcasted_iota(jnp.int32, (B, tn), 1) + t * tn
    onehot = n_glob == labels                                     # (B, tn)

    # torch scatter_ quirk: mask[0, labels[b], 0] = 1 -> margin only on batch
    # row 0 / subcenter 0, at every class present in `labels`.  mask_k==0 for
    # k>0, so mean_k(mask*phi + (1-mask)*cos) = (1/K)*(sum_k cos_k + mask0*(phi0-cos0)).
    hit_any = jnp.max(onehot.astype(jnp.float32), axis=0, keepdims=True)  # (1, tn)
    row0 = jax.lax.broadcasted_iota(jnp.int32, (B, tn), 0) == 0
    mask0 = jnp.where(row0, hit_any, 0.0)                         # (B, tn)

    logits = (s / K) * (cos_sum + mask0 * (phi0 - cos0))          # (B, tn)
    # ragged / overhanging class columns -> -inf BEFORE the running max, so
    # garbage in padded prototype lanes can never poison valid results.
    # TODO(synk): gate this select to the single ragged tile if VPU slots ever
    # become the constraint.
    logits = jnp.where(n_glob < num_classes, logits, _NEG)

    # ---- online logsumexp + target-logit partials (per split) ---------------
    m_old = m_ref[0]
    tile_max = jnp.max(logits, axis=-1, keepdims=True)            # (B, 1)
    m_new = jnp.maximum(m_old, tile_max)
    alpha = jnp.exp(m_old - m_new)
    l_ref[0] = alpha * l_ref[0] + jnp.sum(jnp.exp(logits - m_new),
                                          axis=-1, keepdims=True)
    t_ref[0] = t_ref[0] + jnp.sum(jnp.where(onehot, logits, 0.0),
                                  axis=-1, keepdims=True)
    m_ref[0] = m_new


# ---------------------------------------------------------------------------
# Host-side helpers
# ---------------------------------------------------------------------------
def _encode_labels(labels):
    """Device-side LinearSequenceEncoder.encode_list: map each label to its
    index in order of first appearance (0, 1, 2, ...).  Pure jnp -> jittable."""
    lab = labels.astype(jnp.int32)
    b = lab.shape[0]
    eq = lab[:, None] == lab[None, :]                   # (B, B)
    first_idx = jnp.argmax(eq, axis=1)                  # first pos with same label
    is_first = first_idx == jnp.arange(b)
    rank = jnp.cumsum(is_first.astype(jnp.int32)) - 1   # rank of first occurrences
    return rank[first_idx]                              # (B,)


def _vmem_capacity_bytes():
    try:
        return int(pltpu.get_tpu_info().vmem_capacity_bytes)
    except Exception:
        return 64 * 1024 * 1024     # conservative fallback (v7x per-core VMEM)


def _pick_class_tile(num_classes, k, e, batch, budget_bytes):
    """Largest lane-dense (multiple of 128) class tile that fits the budget.
    Per class column kept live in VMEM:
      * double-buffered bf16 prototype tile: 2 * K * E * 2 bytes
      * ~8 f32 (B, tn) per-tile intermediates (cos_k, cos_sum, phi, logits,
        masks): 8 * B * 4 bytes."""
    if num_classes <= 128:
        return num_classes                               # single (ragged) tile
    per_col = 2 * k * e * 2 + 8 * batch * 4
    tn = budget_bytes // per_col
    tn = max(128, min(tn, 2048))
    tn = (tn // 128) * 128
    tn = min(tn, max(128, (num_classes // 128) * 128))
    return int(tn)


def arcface_loss(embeddings, labels, prototypes, *, s=64.0, angle_margin=0.5,
                 additive_margin=0.0, class_tile=None, num_splits=None):
    """Forward pass of ArcFaceLoss (purpose='train', use_focal_loss=False,
    label_smoothing=0.0, use_class_weights=False, labels_onehot=None)."""
    B, E = embeddings.shape
    K, N, E2 = prototypes.shape
    assert E == E2

    labels_enc = _encode_labels(labels).reshape(B, 1)

    # one-shot prototype normalization -> bf16, class-last (K, E, N) layout
    proto_t = _normalize_prototypes(prototypes)

    # generation-aware class tile + explicit VMEM limit
    vmem_cap = _vmem_capacity_bytes()
    vmem_limit = int(max(32 << 20, min(vmem_cap * 3 // 4, 100 << 20)))
    tn = class_tile if class_tile is not None else _pick_class_tile(
        N, K, E, B, budget_bytes=vmem_limit // 2)
    n_blocks = pl.cdiv(N, tn)

    # class-range splits: one per TensorCore (v7x megacore); neutral on
    # single-core v5e/v6e (same total tiles; partials combined below).
    P = num_splits if num_splits is not None else min(2, n_blocks)
    P = max(1, min(int(P), n_blocks))
    tps = pl.cdiv(n_blocks, P)

    if P * tps == n_blocks:
        proto_idx = lambda p, j: (0, 0, p * tps + j)
    else:
        # last split overhangs: clamp the block index to avoid OOB DMA; the
        # kernel masks the duplicated columns via the n_glob < num_classes check.
        proto_idx = lambda p, j: (0, 0, jnp.minimum(p * tps + j, n_blocks - 1))

    kernel = functools.partial(
        _arcface_kernel,
        s=float(s),
        cos_m=float(math.cos(angle_margin)),
        sin_m=float(math.sin(angle_margin)),
        add_m=float(additive_margin),
        k_subcenters=K,
        num_classes=N,
        batch=B,
        class_tile=tn,
        tiles_per_split=tps,
    )

    cost = pl.CostEstimate(
        flops=2 * B * K * P * tps * tn * E,
        transcendentals=B * P * tps * tn + B * E,          # exp in LSE + rsqrt
        bytes_accessed=K * N * E * 2 + B * E * 4 + B * 4 + 3 * P * B * 4,
    )

    part_shape = jax.ShapeDtypeStruct((P, B, 1), jnp.float32)
    part_spec = pl.BlockSpec((1, B, 1), lambda p, j: (p, 0, 0))

    m_part, l_part, t_part = pl.pallas_call(
        kernel,
        out_shape=(part_shape, part_shape, part_shape),
        grid_spec=pltpu.PrefetchScalarGridSpec(
            num_scalar_prefetch=0,
            grid=(P, tps),
            in_specs=[
                pl.BlockSpec((B, E), lambda p, j: (0, 0)),      # embeddings (resident)
                pl.BlockSpec((K, E, tn), proto_idx),            # bf16 proto class tile
                pl.BlockSpec((B, 1), lambda p, j: (0, 0)),      # encoded labels
            ],
            out_specs=[part_spec, part_spec, part_spec],
            scratch_shapes=[
                pltpu.VMEM((B, E), jnp.bfloat16),   # normalized embeddings (bf16)
            ],
        ),
        compiler_params=pltpu.CompilerParams(
            dimension_semantics=("parallel", "arbitrary"),
            vmem_limit_bytes=vmem_limit,
        ),
        cost_estimate=cost,
    )(embeddings.astype(jnp.float32), proto_t, labels_enc)

    # combine per-split partial logsumexp / target-logit sums (tiny, (P, B))
    m = m_part[:, :, 0]
    l = l_part[:, :, 0]
    t = t_part[:, :, 0]
    m_all = jnp.max(m, axis=0)                               # (B,)
    l_all = jnp.sum(jnp.exp(m - m_all[None, :]) * l, axis=0)
    t_all = jnp.sum(t, axis=0)
    per_sample = (m_all + jnp.log(l_all)) - t_all            # CE, reduction='none'
    # use_class_weights=False -> class_freqs == 1, so `loss * 1/class_freqs`
    # is a no-op; final reduction is the batch mean.
    loss = jnp.mean(per_sample)

    # Module returns (loss, Tensor([-1.0]), Tensor([-1.0]))
    return (loss,
            jnp.array([-1.0], jnp.float32),
            jnp.array([-1.0], jnp.float32))


def init_prototypes(key, k_subcenters, num_classes, embedding_size):
    """Deterministic xavier_uniform_ equivalent for a (K, N, E) tensor:
    fan_in = N * E, fan_out = K * E, bound = sqrt(6 / (fan_in + fan_out))."""
    fan_in = num_classes * embedding_size
    fan_out = k_subcenters * embedding_size
    bound = math.sqrt(6.0 / (fan_in + fan_out))
    return jax.random.uniform(
        key, (k_subcenters, num_classes, embedding_size),
        jnp.float32, minval=-bound, maxval=bound)


if __name__ == "__main__":
    key = jax.random.PRNGKey(0)
    B, E, N, K = 8, 32, 182, 2   # batch, embedding_size, num_classes, k_subcenters

    k_emb, k_lab, k_proto = jax.random.split(key, 3)
    embeddings = jax.random.normal(k_emb, (B, E), jnp.float32)
    labels = jax.random.randint(k_lab, (B,), 0, N, jnp.int32)
    prototypes = init_prototypes(k_proto, K, N, E)

    loss_fn = jax.jit(arcface_loss)
    loss, pos_dist, neg_dist = loss_fn(embeddings, labels, prototypes)
    jax.block_until_ready(loss)
    print("KERNEL_OK")
</pallas_src>

<mosaic_0001>
module attributes {stable_mosaic.version = 11 : i64} {
  func.func @_proto_norm_kernel(%arg0: i32, %arg1: i32, %arg2: memref<1x182x32xf32, #tpu.memory_space<vmem>>, %arg3: memref<1x182x32xbf16, #tpu.memory_space<vmem>>) attributes {dimension_semantics = [#tpu.dimension_semantics<parallel>, #tpu.dimension_semantics<parallel>], iteration_bounds = array<i64: 2, 1>, scalar_prefetch = 0 : i64, scratch_operands = 0 : i64, tpu.core_type = #tpu.core_type<tc>, window_params = [{transform_indices = @transform_0, window_bounds = array<i64: 1, 182, 32>}, {transform_indices = @transform_1, window_bounds = array<i64: 1, 182, 32>}]} {
    %c0 = arith.constant 0 : index
    %c0_0 = arith.constant 0 : index
    %c0_1 = arith.constant 0 : index
    %0 = vector.load %arg2[%c0, %c0_0, %c0_1] : memref<1x182x32xf32, #tpu.memory_space<vmem>>, vector<1x182x32xf32>
    %1 = vector.shape_cast %0 : vector<1x182x32xf32> to vector<182x32xf32>
    %2 = arith.mulf %1, %1 : vector<182x32xf32>
    %cst = arith.constant dense<0.000000e+00> : vector<182xf32>
    %3 = vector.multi_reduction <add>, %2, %cst [1] : vector<182x32xf32> to vector<182xf32>
    %4 = vector.shape_cast %3 : vector<182xf32> to vector<182x1xf32>
    %cst_2 = arith.constant 1.000000e-24 : f32
    %5 = vector.broadcast %cst_2 : f32 to vector<182x1xf32>
    %6 = arith.maximumf %4, %5 : vector<182x1xf32>
    %7 = math.rsqrt %6 : vector<182x1xf32>
    %8 = tpu.iota {dimensions = array<i32: 0>} : vector<182x32xi32>
    %c182_i32 = arith.constant 182 : i32
    %9 = arith.muli %arg1, %c182_i32 : i32
    %10 = vector.broadcast %9 : i32 to vector<182x32xi32>
    %11 = arith.addi %8, %10 : vector<182x32xi32>
    %c182_i32_3 = arith.constant 182 : i32
    %12 = vector.broadcast %c182_i32_3 : i32 to vector<182x32xi32>
    %13 = arith.cmpi slt, %11, %12 : vector<182x32xi32>
    %14 = vector.broadcast %7 : vector<182x1xf32> to vector<182x32xf32>
    %15 = arith.mulf %1, %14 : vector<182x32xf32>
    %cst_4 = arith.constant 0.000000e+00 : f32
    %16 = vector.broadcast %cst_4 : f32 to vector<182x32xf32>
    %17 = arith.select %13, %15, %16 : vector<182x32xi1>, vector<182x32xf32>
    %18 = arith.truncf %17 : vector<182x32xf32> to vector<182x32xbf16>
    %c0_5 = arith.constant 0 : index
    %c0_6 = arith.constant 0 : index
    %c0_7 = arith.constant 0 : index
    %19 = vector.load %arg3[%c0_5, %c0_6, %c0_7] : memref<1x182x32xbf16, #tpu.memory_space<vmem>>, vector<1x182x32xbf16>
    %20 = vector.shape_cast %19 : vector<1x182x32xbf16> to vector<182x32xbf16>
    %21 = vector.shape_cast %18 : vector<182x32xbf16> to vector<1x182x32xbf16>
    tpu.vector_store %arg3[%c0_5, %c0_6, %c0_7], %21 {strides = array<i32>} : memref<1x182x32xbf16, #tpu.memory_space<vmem>>, vector<1x182x32xbf16>,
    return
  }
  func.func @transform_0(%arg0: i32, %arg1: i32) -> (i32, i32, i32) {
    %c0_i32 = arith.constant 0 : i32
    %c0_i32_0 = arith.constant 0 : i32
    return %arg0, %arg1, %c0_i32 : i32, i32, i32
  }
  func.func @transform_1(%arg0: i32, %arg1: i32) -> (i32, i32, i32) {
    %c0_i32 = arith.constant 0 : i32
    %c0_i32_0 = arith.constant 0 : i32
    return %arg0, %arg1, %c0_i32 : i32, i32, i32
  }
}

module attributes {stable_mosaic.version = 11 : i64} {
  func.func @_arcface_kernel(%arg0: i32, %arg1: i32, %arg2: memref<8x32xf32, #tpu.memory_space<vmem>>, %arg3: memref<2x32x128xbf16, #tpu.memory_space<vmem>>, %arg4: memref<8x1xi32, #tpu.memory_space<vmem>>, %arg5: memref<1x8x1xf32, #tpu.memory_space<vmem>>, %arg6: memref<1x8x1xf32, #tpu.memory_space<vmem>>, %arg7: memref<1x8x1xf32, #tpu.memory_space<vmem>>, %arg8: memref<8x32xbf16, #tpu.memory_space<vmem>>) attributes {dimension_semantics = [#tpu.dimension_semantics<parallel>, #tpu.dimension_semantics<arbitrary>], iteration_bounds = array<i64: 2, 1>, scalar_prefetch = 0 : i64, scratch_operands = 1 : i64, tpu.core_type = #tpu.core_type<tc>, window_params = [{pipeline_mode = #tpu.pipeline_mode<synchronous>, transform_indices = @transform_0, window_bounds = array<i64: 8, 32>}, {transform_indices = @transform_1, window_bounds = array<i64: 2, 32, 128>}, {pipeline_mode = #tpu.pipeline_mode<synchronous>, transform_indices = @transform_2, window_bounds = array<i64: 8, 1>}, {transform_indices = @transform_3, window_bounds = array<i64: 1, 8, 1>}, {transform_indices = @transform_4, window_bounds = array<i64: 1, 8, 1>}, {transform_indices = @transform_5, window_bounds = array<i64: 1, 8, 1>}]} {
    %c1_i32 = arith.constant 1 : i32
    %0 = arith.muli %arg0, %c1_i32 : i32
    %1 = arith.addi %0, %arg1 : i32
    %c0_i32 = arith.constant 0 : i32
    %2 = arith.cmpi eq, %arg1, %c0_i32 : i32
    %3 = arith.extui %2 : i1 to i32
    %c0_i32_0 = arith.constant 0 : i32
    %4 = arith.cmpi ne, %3, %c0_i32_0 : i32
    scf.if %4 {
      %c0_44 = arith.constant 0 : index
      %c0_45 = arith.constant 0 : index
      %89 = vector.load %arg2[%c0_44, %c0_45] : memref<8x32xf32, #tpu.memory_space<vmem>>, vector<8x32xf32>
      %90 = arith.mulf %89, %89 : vector<8x32xf32>
      %cst_46 = arith.constant dense<0.000000e+00> : vector<8xf32>
      %91 = vector.multi_reduction <add>, %90, %cst_46 [1] : vector<8x32xf32> to vector<8xf32>
      %92 = vector.shape_cast %91 : vector<8xf32> to vector<8x1xf32>
      %cst_47 = arith.constant 1.000000e-24 : f32
      %93 = vector.broadcast %cst_47 : f32 to vector<8x1xf32>
      %94 = arith.maximumf %92, %93 : vector<8x1xf32>
      %95 = math.rsqrt %94 : vector<8x1xf32>
      %96 = vector.broadcast %95 : vector<8x1xf32> to vector<8x32xf32>
      %97 = arith.mulf %89, %96 : vector<8x32xf32>
      %98 = arith.truncf %97 : vector<8x32xf32> to vector<8x32xbf16>
      %c0_48 = arith.constant 0 : index
      %c0_49 = arith.constant 0 : index
      %99 = vector.load %arg8[%c0_48, %c0_49] : memref<8x32xbf16, #tpu.memory_space<vmem>>, vector<8x32xbf16>
      tpu.vector_store %arg8[%c0_48, %c0_49], %98 {strides = array<i32>} : memref<8x32xbf16, #tpu.memory_space<vmem>>, vector<8x32xbf16>,
      %cst_50 = arith.constant -1.000000e+30 : f32
      %100 = vector.broadcast %cst_50 : f32 to vector<8x1xf32>
      %c0_51 = arith.constant 0 : index
      %c0_52 = arith.constant 0 : index
      %c0_53 = arith.constant 0 : index
      %101 = vector.load %arg5[%c0_51, %c0_52, %c0_53] : memref<1x8x1xf32, #tpu.memory_space<vmem>>, vector<1x8x1xf32>
      %102 = vector.shape_cast %101 : vector<1x8x1xf32> to vector<8x1xf32>
      %103 = vector.shape_cast %100 : vector<8x1xf32> to vector<1x8x1xf32>
      tpu.vector_store %arg5[%c0_51, %c0_52, %c0_53], %103 {strides = array<i32>} : memref<1x8x1xf32, #tpu.memory_space<vmem>>, vector<1x8x1xf32>,
      %cst_54 = arith.constant 0.000000e+00 : f32
      %104 = vector.broadcast %cst_54 : f32 to vector<8x1xf32>
      %c0_55 = arith.constant 0 : index
      %c0_56 = arith.constant 0 : index
      %c0_57 = arith.constant 0 : index
      %105 = vector.load %arg6[%c0_55, %c0_56, %c0_57] : memref<1x8x1xf32, #tpu.memory_space<vmem>>, vector<1x8x1xf32>
      %106 = vector.shape_cast %105 : vector<1x8x1xf32> to vector<8x1xf32>
      %107 = vector.shape_cast %104 : vector<8x1xf32> to vector<1x8x1xf32>
      tpu.vector_store %arg6[%c0_55, %c0_56, %c0_57], %107 {strides = array<i32>} : memref<1x8x1xf32, #tpu.memory_space<vmem>>, vector<1x8x1xf32>,
      %cst_58 = arith.constant 0.000000e+00 : f32
      %108 = vector.broadcast %cst_58 : f32 to vector<8x1xf32>
      %c0_59 = arith.constant 0 : index
      %c0_60 = arith.constant 0 : index
      %c0_61 = arith.constant 0 : index
      %109 = vector.load %arg7[%c0_59, %c0_60, %c0_61] : memref<1x8x1xf32, #tpu.memory_space<vmem>>, vector<1x8x1xf32>
      %110 = vector.shape_cast %109 : vector<1x8x1xf32> to vector<8x1xf32>
      %111 = vector.shape_cast %108 : vector<8x1xf32> to vector<1x8x1xf32>
      tpu.vector_store %arg7[%c0_59, %c0_60, %c0_61], %111 {strides = array<i32>} : memref<1x8x1xf32, #tpu.memory_space<vmem>>, vector<1x8x1xf32>,
    } else {
    }
    %c0 = arith.constant 0 : index
    %c0_1 = arith.constant 0 : index
    %5 = vector.load %arg8[%c0, %c0_1] : memref<8x32xbf16, #tpu.memory_space<vmem>>, vector<8x32xbf16>
    %c0_2 = arith.constant 0 : index
    %c0_3 = arith.constant 0 : index
    %c0_4 = arith.constant 0 : index
    %6 = vector.load %arg3[%c0_2, %c0_3, %c0_4] : memref<2x32x128xbf16, #tpu.memory_space<vmem>>, vector<1x32x128xbf16>
    %7 = vector.shape_cast %6 : vector<1x32x128xbf16> to vector<32x128xbf16>
    %cst = arith.constant dense<0.000000e+00> : vector<8x128xf32>
    %8 = tpu.matmul %5, %7, %cst {dimension_numbers = #tpu.dot_dimension_numbers<[1], [0], [0], [1], [0, 0, 1, 1], [], []>} : vector<8x32xbf16>, vector<32x128xbf16>, vector<8x128xf32> -> vector<8x128xf32>
    %c1 = arith.constant 1 : index
    %c0_5 = arith.constant 0 : index
    %c0_6 = arith.constant 0 : index
    %9 = vector.load %arg3[%c1, %c0_5, %c0_6] : memref<2x32x128xbf16, #tpu.memory_space<vmem>>, vector<1x32x128xbf16>
    %10 = vector.shape_cast %9 : vector<1x32x128xbf16> to vector<32x128xbf16>
    %cst_7 = arith.constant dense<0.000000e+00> : vector<8x128xf32>
    %11 = tpu.matmul %5, %10, %cst_7 {dimension_numbers = #tpu.dot_dimension_numbers<[1], [0], [0], [1], [0, 0, 1, 1], [], []>} : vector<8x32xbf16>, vector<32x128xbf16>, vector<8x128xf32> -> vector<8x128xf32>
    %12 = arith.addf %8, %11 : vector<8x128xf32>
    %13 = arith.mulf %8, %8 : vector<8x128xf32>
    %cst_8 = arith.constant 1.000000e+00 : f32
    %14 = vector.broadcast %cst_8 : f32 to vector<8x128xf32>
    %15 = arith.subf %14, %13 : vector<8x128xf32>
    %cst_9 = arith.constant 9.99999993E-9 : f32
    %16 = vector.broadcast %cst_9 : f32 to vector<8x128xf32>
    %17 = arith.maximumf %15, %16 : vector<8x128xf32>
    %18 = math.sqrt %17 : vector<8x128xf32>
    %cst_10 = arith.constant 9.99999993E-9 : f32
    %cst_11 = arith.constant 1.000000e+00 : f32
    %19 = vector.broadcast %cst_10 : f32 to vector<8x128xf32>
    %20 = arith.maximumf %19, %18 : vector<8x128xf32>
    %21 = vector.broadcast %cst_11 : f32 to vector<8x128xf32>
    %22 = arith.minimumf %21, %20 : vector<8x128xf32>
    %cst_12 = arith.constant 0.87758255 : f32
    %23 = vector.broadcast %cst_12 : f32 to vector<8x128xf32>
    %24 = arith.mulf %23, %8 : vector<8x128xf32>
    %cst_13 = arith.constant 0.47942555 : f32
    %25 = vector.broadcast %cst_13 : f32 to vector<8x128xf32>
    %26 = arith.mulf %25, %22 : vector<8x128xf32>
    %27 = arith.subf %24, %26 : vector<8x128xf32>
    %cst_14 = arith.constant 0.000000e+00 : f32
    %28 = vector.broadcast %cst_14 : f32 to vector<8x128xf32>
    %29 = arith.subf %27, %28 : vector<8x128xf32>
    %c0_15 = arith.constant 0 : index
    %c0_16 = arith.constant 0 : index
    %30 = vector.load %arg4[%c0_15, %c0_16] : memref<8x1xi32, #tpu.memory_space<vmem>>, vector<8x1xi32>
    %31 = tpu.iota {dimensions = array<i32: 1>} : vector<8x128xi32>
    %c128_i32 = arith.constant 128 : i32
    %32 = arith.muli %1, %c128_i32 : i32
    %33 = vector.broadcast %32 : i32 to vector<8x128xi32>
    %34 = arith.addi %31, %33 : vector<8x128xi32>
    %35 = vector.broadcast %30 : vector<8x1xi32> to vector<8x128xi32>
    %36 = arith.cmpi eq, %34, %35 : vector<8x128xi32>
    %37 = arith.extui %36 : vector<8x128xi1> to vector<8x128xi32>
    %38 = arith.sitofp %37 : vector<8x128xi32> to vector<8x128xf32>
    %cst_17 = arith.constant dense<0xFF800000> : vector<128xf32>
    %39 = vector.multi_reduction <maximumf>, %38, %cst_17 [0] : vector<8x128xf32> to vector<128xf32>
    %40 = vector.shape_cast %39 : vector<128xf32> to vector<1x128xf32>
    %41 = tpu.iota {dimensions = array<i32: 0>} : vector<8x128xi32>
    %c0_i32_18 = arith.constant 0 : i32
    %42 = vector.broadcast %c0_i32_18 : i32 to vector<8x128xi32>
    %43 = arith.cmpi eq, %41, %42 : vector<8x128xi32>
    %cst_19 = arith.constant 0.000000e+00 : f32
    %44 = vector.shape_cast %40 : vector<1x128xf32> to vector<1x128xf32>
    %45 = vector.broadcast %44 : vector<1x128xf32> to vector<8x128xf32>
    %46 = vector.broadcast %cst_19 : f32 to vector<8x128xf32>
    %47 = arith.select %43, %45, %46 : vector<8x128xi1>, vector<8x128xf32>
    %48 = arith.subf %29, %8 : vector<8x128xf32>
    %49 = arith.mulf %47, %48 : vector<8x128xf32>
    %50 = arith.addf %12, %49 : vector<8x128xf32>
    %cst_20 = arith.constant 3.200000e+01 : f32
    %51 = vector.broadcast %cst_20 : f32 to vector<8x128xf32>
    %52 = arith.mulf %51, %50 : vector<8x128xf32>
    %c182_i32 = arith.constant 182 : i32
    %53 = vector.broadcast %c182_i32 : i32 to vector<8x128xi32>
    %54 = arith.cmpi slt, %34, %53 : vector<8x128xi32>
    %cst_21 = arith.constant -1.000000e+30 : f32
    %55 = vector.broadcast %cst_21 : f32 to vector<8x128xf32>
    %56 = arith.select %54, %52, %55 : vector<8x128xi1>, vector<8x128xf32>
    %c0_22 = arith.constant 0 : index
    %c0_23 = arith.constant 0 : index
    %c0_24 = arith.constant 0 : index
    %57 = vector.load %arg5[%c0_22, %c0_23, %c0_24] : memref<1x8x1xf32, #tpu.memory_space<vmem>>, vector<1x8x1xf32>
    %58 = vector.shape_cast %57 : vector<1x8x1xf32> to vector<8x1xf32>
    %cst_25 = arith.constant dense<0xFF800000> : vector<8xf32>
    %59 = vector.multi_reduction <maximumf>, %56, %cst_25 [1] : vector<8x128xf32> to vector<8xf32>
    %60 = vector.shape_cast %59 : vector<8xf32> to vector<8x1xf32>
    %61 = arith.maximumf %58, %60 : vector<8x1xf32>
    %62 = arith.subf %58, %61 : vector<8x1xf32>
    %63 = math.exp %62 : vector<8x1xf32>
    %c0_26 = arith.constant 0 : index
    %c0_27 = arith.constant 0 : index
    %c0_28 = arith.constant 0 : index
    %64 = vector.load %arg6[%c0_26, %c0_27, %c0_28] : memref<1x8x1xf32, #tpu.memory_space<vmem>>, vector<1x8x1xf32>
    %65 = vector.shape_cast %64 : vector<1x8x1xf32> to vector<8x1xf32>
    %66 = arith.mulf %63, %65 : vector<8x1xf32>
    %67 = vector.broadcast %61 : vector<8x1xf32> to vector<8x128xf32>
    %68 = arith.subf %56, %67 : vector<8x128xf32>
    %69 = math.exp %68 : vector<8x128xf32>
    %cst_29 = arith.constant dense<0.000000e+00> : vector<8xf32>
    %70 = vector.multi_reduction <add>, %69, %cst_29 [1] : vector<8x128xf32> to vector<8xf32>
    %71 = vector.shape_cast %70 : vector<8xf32> to vector<8x1xf32>
    %72 = arith.addf %66, %71 : vector<8x1xf32>
    %c0_30 = arith.constant 0 : index
    %c0_31 = arith.constant 0 : index
    %c0_32 = arith.constant 0 : index
    %73 = vector.load %arg6[%c0_30, %c0_31, %c0_32] : memref<1x8x1xf32, #tpu.memory_space<vmem>>, vector<1x8x1xf32>
    %74 = vector.shape_cast %73 : vector<1x8x1xf32> to vector<8x1xf32>
    %75 = vector.shape_cast %72 : vector<8x1xf32> to vector<1x8x1xf32>
    tpu.vector_store %arg6[%c0_30, %c0_31, %c0_32], %75 {strides = array<i32>} : memref<1x8x1xf32, #tpu.memory_space<vmem>>, vector<1x8x1xf32>,
    %c0_33 = arith.constant 0 : index
    %c0_34 = arith.constant 0 : index
    %c0_35 = arith.constant 0 : index
    %76 = vector.load %arg7[%c0_33, %c0_34, %c0_35] : memref<1x8x1xf32, #tpu.memory_space<vmem>>, vector<1x8x1xf32>
    %77 = vector.shape_cast %76 : vector<1x8x1xf32> to vector<8x1xf32>
    %cst_36 = arith.constant 0.000000e+00 : f32
    %78 = vector.broadcast %cst_36 : f32 to vector<8x128xf32>
    %79 = arith.select %36, %56, %78 : vector<8x128xi1>, vector<8x128xf32>
    %cst_37 = arith.constant dense<0.000000e+00> : vector<8xf32>
    %80 = vector.multi_reduction <add>, %79, %cst_37 [1] : vector<8x128xf32> to vector<8xf32>
    %81 = vector.shape_cast %80 : vector<8xf32> to vector<8x1xf32>
    %82 = arith.addf %77, %81 : vector<8x1xf32>
    %c0_38 = arith.constant 0 : index
    %c0_39 = arith.constant 0 : index
    %c0_40 = arith.constant 0 : index
    %83 = vector.load %arg7[%c0_38, %c0_39, %c0_40] : memref<1x8x1xf32, #tpu.memory_space<vmem>>, vector<1x8x1xf32>
    %84 = vector.shape_cast %83 : vector<1x8x1xf32> to vector<8x1xf32>
    %85 = vector.shape_cast %82 : vector<8x1xf32> to vector<1x8x1xf32>
    tpu.vector_store %arg7[%c0_38, %c0_39, %c0_40], %85 {strides = array<i32>} : memref<1x8x1xf32, #tpu.memory_space<vmem>>, vector<1x8x1xf32>,
    %c0_41 = arith.constant 0 : index
    %c0_42 = arith.constant 0 : index
    %c0_43 = arith.constant 0 : index
    %86 = vector.load %arg5[%c0_41, %c0_42, %c0_43] : memref<1x8x1xf32, #tpu.memory_space<vmem>>, vector<1x8x1xf32>
    %87 = vector.shape_cast %86 : vector<1x8x1xf32> to vector<8x1xf32>
    %88 = vector.shape_cast %61 : vector<8x1xf32> to vector<1x8x1xf32>
    tpu.vector_store %arg5[%c0_41, %c0_42, %c0_43], %88 {strides = array<i32>} : memref<1x8x1xf32, #tpu.memory_space<vmem>>, vector<1x8x1xf32>,
    return
  }
  func.func @transform_0(%arg0: i32, %arg1: i32) -> (i32, i32) {
    %c0_i32 = arith.constant 0 : i32
    %c0_i32_0 = arith.constant 0 : i32
    %c0_i32_1 = arith.constant 0 : i32
    return %c0_i32, %c0_i32_0 : i32, i32
  }
  func.func @transform_1(%arg0: i32, %arg1: i32) -> (i32, i32, i32) {
    %c1_i32 = arith.constant 1 : i32
    %0 = arith.muli %arg0, %c1_i32 : i32
    %1 = arith.addi %0, %arg1 : i32
    %c0_i32 = arith.constant 0 : i32
    %c0_i32_0 = arith.constant 0 : i32
    %c0_i32_1 = arith.constant 0 : i32
    return %c0_i32, %c0_i32_0, %1 : i32, i32, i32
  }
  func.func @transform_2(%arg0: i32, %arg1: i32) -> (i32, i32) {
    %c0_i32 = arith.constant 0 : i32
    %c0_i32_0 = arith.constant 0 : i32
    %c0_i32_1 = arith.constant 0 : i32
    return %c0_i32, %c0_i32_0 : i32, i32
  }
  func.func @transform_3(%arg0: i32, %arg1: i32) -> (i32, i32, i32) {
    %c0_i32 = arith.constant 0 : i32
    %c0_i32_0 = arith.constant 0 : i32
    %c0_i32_1 = arith.constant 0 : i32
    return %arg0, %c0_i32, %c0_i32_0 : i32, i32, i32
  }
  func.func @transform_4(%arg0: i32, %arg1: i32) -> (i32, i32, i32) {
    %c0_i32 = arith.constant 0 : i32
    %c0_i32_0 = arith.constant 0 : i32
    %c0_i32_1 = arith.constant 0 : i32
    return %arg0, %c0_i32, %c0_i32_0 : i32, i32, i32
  }
  func.func @transform_5(%arg0: i32, %arg1: i32) -> (i32, i32, i32) {
    %c0_i32 = arith.constant 0 : i32
    %c0_i32_0 = arith.constant 0 : i32
    %c0_i32_1 = arith.constant 0 : i32
    return %arg0, %c0_i32, %c0_i32_0 : i32, i32, i32
  }
}

</mosaic_0001>

<bundles_post_ra>
// kernel: arcface_loss.3
= control target key start
LH: loop header
LB: loop body
LE: loop exit
PB: predicated region body
PF: predicated region fallthrough
CT: control target
= control target key end

     0   :  { %s801_s18 = smov 0   ;;  %s803_s19 = smov 0   ;;  %s917_s0 = inlined_call_operand.vmem [shape: f32[8,32], index: 0, kind: input, shape index: {}]   ;;  %s918_s1 = inlined_call_operand.vmem [shape: bf16[2,32,182], index: 1, kind: input, shape index: {}]   ;;  %s919_s2 = inlined_call_operand.vmem [shape: s32[8,1], index: 2, kind: input, shape index: {}]   ;;  %s920_s3 = inlined_call_operand.vmem [shape: f32[2,8,1], index: 3, kind: output, shape index: {0}]   ;;  %s921_s4 = inlined_call_operand.vmem [shape: f32[2,8,1], index: 4, kind: output, shape index: {1}]   ;;  %s922_s5 = inlined_call_operand.vmem [shape: f32[2,8,1], index: 5, kind: output, shape index: {2}]  }
   0x1   :  { %s805_s20 = smov 0   ;;  %s807_s21 = smov 0  }
   0x2   :  { %s809_s22 = smov 0  }
   0x3 LB: > { %s28_s23 = sadd.s32 1, %s762_s21  ;;  %p65_p1 = scmp.ne.s32.totalorder %s754_s19, %s750_s18  ;;  %s766_s22 = sphi %s809_s22, %s16_s22   ;;  %s762_s21 = sphi %s807_s21, %s926_s21   ;;  %s758_s20 = sphi %s805_s20, %s925_s20   ;;  %s754_s19 = sphi %s803_s19, %s924_s19   ;;  %s750_s18 = sphi %s801_s18, %s923_s18  }
   0x4   : > { %p30_p0 = scmp.ge.s32.totalorder %s28_s23, 2  ;;  %p66_p2 = scmp.eq.s32.totalorder %s766_s22, 0 }
   0x5   : > { %s58_s25 = sadd.s32 1, %s754_s19  ;;  %p637_p5 = scmp.ge.s32.totalorder %s766_s22, 2 }
   0x6   : > { %s928_s23 = smov (%p30_p0, %s28_s23), 0  ;;  %p67_p3 = por %p66_p2, %p65_p1 }
   0x7   : > { %s55_s24 = ssub.s32 %s762_s21, %s928_s23  ;;  %196 = sbr.rel (%p637_p5) target bundleno = 24 (0x18), region = 24 }
   0x8   : > { %p56_p4 = scmp.eq.s32.totalorder %s55_s24, 0 }
   0xa   : > { %s836_s26 = scalar_select %p56_p4, %s754_s19, %s58_s25  }
   0xc   : > { %199 = sbr.rel (!%p67_p3) target bundleno = 24 (0x18), region = 28  ;;  %s201_s27 = sand.u32 (%p67_p3), 1, %s754_s19  }
   0xd   : > { %s639_s28 = sshll.u32 (%p67_p3), %s762_s21, 2  ;;  %s638_s29 = sshll.u32 (%p67_p3), %s201_s27, 5 }
   0xe   : > { %s206_s7 = scalar_lea.vmem (%p67_p3), %s918_s1, %s639_s28  ;;  %s203_s8 = scalar_lea.vmem (%p67_p3), [#allocation3], %s638_s29 }
   0xf   : > { %v223_v0 = vld [vmem:[%s206_s7] sm:$0xf] (%p67_p3)  ;;  %v225_v1 = vld [vmem:[%s206_s7 + $0x8] sm:$0xf] (%p67_p3)  ;;  %v227_v2 = vld [vmem:[%s206_s7 + $0x10] sm:$0xf] (%p67_p3) }
  0x10   : > { %224 = vst [vmem:[%s203_s8] sm:$0xf] (%p67_p3), %v223_v0  ;;  %v229_v3 = vld [vmem:[%s206_s7 + $0x18] sm:$0xf] (%p67_p3)  ;;  %v231_v4 = vld [vmem:[%s206_s7 + $0x20] sm:$0xf] (%p67_p3) }
  0x11   : > { %226 = vst [vmem:[%s203_s8 + $0x4] sm:$0xf] %v225_v1  ;;  %v233_v5 = vld [vmem:[%s206_s7 + $0x28] sm:$0xf]  ;;  %v235_v6 = vld [vmem:[%s206_s7 + $0x30] sm:$0xf] }
  0x12   : > { %228 = vst [vmem:[%s203_s8 + $0x8] sm:$0xf] %v227_v2  ;;  %v237_v7 = vld [vmem:[%s206_s7 + $0x38] sm:$0xf] }
  0x13   : > { %230 = vst [vmem:[%s203_s8 + $0xc] sm:$0xf] %v229_v3 }
  0x14   : > { %232 = vst [vmem:[%s203_s8 + $0x10] sm:$0xf] %v231_v4 }
  0x15   : > { %234 = vst [vmem:[%s203_s8 + $0x14] sm:$0xf] %v233_v5 }
  0x16   : > { %236 = vst [vmem:[%s203_s8 + $0x18] sm:$0xf] %v235_v6 }
  0x17   : > { %238 = vst [vmem:[%s203_s8 + $0x1c] sm:$0xf] %v237_v7 }
  0x18 PF: > { %p640_p6 = scmp.ge.s32.totalorder %s766_s22, 1  ;;  %p277_p7 = scmp.lt.s32.totalorder %s766_s22, 3 }
  0x1a   : > { %p278_p8 = pnand %p640_p6, %p277_p7 }
  0x1b   : > { %s284_s11 = sand.u32 (!%p278_p8), 1, %s750_s18   ;;  %s667_s16 = sshll.u32 (!%p278_p8), %s758_s20, 7 }
  0x1c   : > { %281 = sbr.rel (%p278_p8) target bundleno = 726 (0x2d6), region = 69  ;;  %s641_s12 = sshll.u32 (!%p278_p8), %s284_s11, 5 }
  0x1d   : > { %s286_s13 = scalar_lea.vmem (!%p278_p8), [#allocation3], %s641_s12  ;;  %p319_p9 = scmp.lt.s32.totalorder (!%p278_p8), %s758_s20, 1 }
  0x21   : > { %v337_v8 = vld [vmem:[%s917_s0] sm:$0xff]  ;;  %vm339_vm0 = vcmask 261120   ;;  %v672_v11 = vld [vmem:[%s286_s13 + $0x8] sm:$0xff]  ;;  %v673_v14 = vld [vmem:[%s286_s13 + $0x10] sm:$0xff]  ;;  %v768_v18 = vmov 0   ;;  %vm356_vm4 = vcmask 257024   ;;  %v448_v29 = vlaneseq }
  0x22   : > { %v338_v9 = vmul.f32 %v337_v8, %v337_v8  ;;  %v674_v12 = vld [vmem:[%s286_s13 + $0x18] sm:$0xff]  ;;  %389 = vmatpush.bf16.msra.mxu0 %v672_v11  ;;  %v671_v13 = vld [vmem:[%s286_s13] sm:$0xff]  ;;  %718 = vset.pattern.permute.xlu0 %v768_v18  ;;  %v451_v33 = vstv %s667_s16  ;;  %s930_s20 = smov (!%p319_p9, %s758_s20), 1  ;;  %v769_v41 = vmov 0.0   ;;  %vm358_vm6 = vcmask 7168  }
  0x23   : > { %419 = vmatpush.bf16.msra.mxu1 %v674_v12  ;;  %v447_v17 = vld [vmem:[%s919_s2] sm:$0xff]  ;;  %719 = vset.pattern.permute.xlu1 %v768_v18  ;;  %v449_v30 = vand.u32 127, %v448_v29  ;;  %s865_s17 = sshll.u32 %s930_s20, 3  ;;  %v770_v46 = vmov -1e+30   ;;  %v466_v61 = vshrl.u32 %v448_v29, 7 }
  0x24   : > { %v340_v10 = vsel %vm339_vm0, %v338_v9, 0.0  ;;  %s874_s25 = scalar_lea.vmem %s920_s3, %s865_s17  ;;  %s882_s28 = scalar_lea.vmem %s921_s4, %s865_s17 }
  0x25   : > { %341 = vadd.xlane.f32.xlu0 %v340_v10  ;;  %v858_v36 = vadd.s32 %v451_v33, %v449_v30  ;;  %359 = vst.msk [vmem:[%s874_s25] sm:$0xff] %vm358_vm6, %v770_v46  ;;  %vm467_vm9 = vcmp.eq.s32.totalorder %v466_v61, 0  ;;  %s330_s6 = scalar_lea.vmem %s922_s5, %s865_s17 }
  0x26   : > { %390 = vmatpush.bf16.msra.mxu0 %v671_v13  ;;  %360 = vst.msk [vmem:[%s882_s28] sm:$0xff] %vm358_vm6, %v769_v41 }
  0x27   : > { %420 = vmatpush.bf16.msra.mxu1 %v673_v14  ;;  %vm473_vm10 = vcmp.lt.s32.totalorder %v858_v36, 182  ;;  %361 = vst.msk [vmem:[%s330_s6] sm:$0xff] %vm358_vm6, %v769_v41 }
  0x2c   : > { %v475_v9 = vld [vmem:[%s874_s25] sm:$0xff] }
  0x39   : > { %454 = vperm.xlu0 %718, %v447_v17  }
  0x98   : > { %v342_v15 = vpop.xlane.xlu0 %341 }
  0x99   : > { %v343_v16 = vmax.f32 %v342_v15, 1e-24 }
  0x9b   : > { %720 = vrsqrt.f32 %v343_v16  ;;  %vm350_vm2 = vweird.f32 %v343_v16 }
  0xa1   : > { %v721_v19 = vpop.eup %720 }
  0xa2   : > { %v345_v20 = vmul.f32 %v721_v19, %v343_v16  ;;  %vm351_vm1 = vweird.f32 %v721_v19 }
  0xa3   : > { %vm352_vm3 = vmor %vm350_vm2, %vm351_vm1 }
  0xa4   : > { %v346_v21 = vmul.f32 %v721_v19, %v345_v20  ;;  %v482_v20 = vld [vmem:[%s882_s28] sm:$0xff] }
  0xa6   : > { %v347_v22 = vmul.f32 0.5, %v346_v21 }
  0xa8   : > { %v348_v23 = vsub.f32 1.5, %v347_v22 }
  0xaa   : > { %v349_v24 = vmul.f32 %v721_v19, %v348_v23 }
  0xab   : > { %v860_v37 = vpop.permute.xlu0 %454 }
  0xac   : > { %v353_v25 = vsel %vm352_vm3, %v721_v19, %v349_v24  ;;  %vm456_vm5 = vcmp.eq.s32.totalorder %v858_v36, %v860_v37  ;;  %v497_v24 = vld [vmem:[%s330_s6] sm:$0xff] }
  0xad   : > { %v354_v26 = vmul.f32 %v353_v25, %v337_v8  ;;  %v668_v42 = vsel %vm456_vm5, 1.0, %v769_v41 }
  0xae   : > { %v459_v44 = vrot.slane %v668_v42, 4 }
  0xaf   : > { %v355_v27 = vpack.c.bf16 %v354_v26, %v354_v26 }
  0xb0   : > { %v460_v48 = vmax.f32 %v668_v42, %v459_v44 }
  0xb1   : > { %357 = vst.msk [vmem:[#allocation2] sm:$0xf] %vm356_vm4, %v355_v27 }
  0xb2   : > { %v461_v51 = vrot.slane %v460_v48, 2 }
  0xb4   : > { %v462_v55 = vmax.f32 %v460_v48, %v461_v51 }
  0xb6   : > { %v463_v59 = vrot.slane %v462_v55, 1 }
  0xb8   : > { %v362_v28 = vld [vmem:[#allocation2] sm:$0xf]  ;;  %v464_v0 = vmax.f32 %v462_v55, %v463_v59 }
  0xb9   : > { %653 = vmatmul.msk.bf16.vlgmr.msra.gmra.mxu0 %vm339_vm0, %v362_v28  ;;  %666 = vmatmul.msk.bf16.vlgmr.msra.gmra.mxu1 %vm339_vm0, %v362_v28 }
  0xba   : > { %v468_v3 = vsel %vm467_vm9, %v464_v0, 0.0 }
 0x136   : > { %v392_v31 = vpop.f32.mrf.mxu0  ;;  %v422_v32 = vpop.f32.mrf.mxu1 }
 0x137   : > { %v427_v34 = vmul.f32 %v392_v31, %v392_v31  ;;  %v444_v62 = vmul.f32 0.87758255, %v392_v31  ;;  %v426_v4 = vadd.f32 %v422_v32, %v392_v31 }
 0x139   : > { %v428_v35 = vsub.f32 1.0, %v427_v34 }
 0x13b   : > { %v429_v38 = vmax.f32 %v428_v35, 1e-08 }
 0x13d   : > { %722 = vrsqrt.f32 %v429_v38  ;;  %vm437_vm7 = vcmp.eq.f32.partialorder %v429_v38, inf  ;;  %v440_v54 = vand.u32 2147483648, %v429_v38  ;;  %vm439_vm8 = vcmp.eq.f32.partialorder %v429_v38, 0.0 }
 0x13e   : > { %v394_v39 = vpop.f32.mrf.mxu0  ;;  %v424_v40 = vpop.f32.mrf.mxu1 }
 0x143   : > { %v723_v43 = vpop.eup %722 }
 0x144   : > { %v431_v45 = vmul.f32 %v723_v43, %v429_v38 }
 0x146   : > { %v432_v47 = vmul.f32 %v723_v43, %v431_v45 }
 0x148   : > { %v433_v49 = vmul.f32 0.5, %v432_v47 }
 0x14a   : > { %v434_v50 = vsub.f32 1.5, %v433_v49 }
 0x14c   : > { %v435_v52 = vmul.f32 %v723_v43, %v434_v50 }
 0x14e   : > { %v436_v53 = vmul.f32 %v435_v52, %v429_v38 }
 0x150   : > { %v438_v56 = vsel %vm437_vm7, %v429_v38, %v436_v53 }
 0x151   : > { %v441_v57 = vsel %vm439_vm8, %v440_v54, %v438_v56 }
 0x152   : > { %v442_v58 = vmax.f32 %v441_v57, 1e-08 }
 0x154   : > { %v443_v60 = vmin.f32 %v442_v58, 1.0 }
 0x156   : > { %v445_v63 = vmul.f32 0.47942555, %v443_v60 }
 0x158   : > { %v446_v1 = vsub.f32 %v444_v62, %v445_v63 }
 0x15a   : > { %v469_v2 = vsub.f32 %v446_v1, %v392_v31 }
 0x15c   : > { %v470_v5 = vmul.f32 %v469_v2, %v468_v3 }
 0x15e   : > { %v471_v6 = vadd.f32 %v470_v5, %v426_v4 }
 0x160   : > { %v472_v7 = vmul.f32 32.0, %v471_v6 }
 0x162   : > { %v474_v8 = vsel %vm473_vm10, %v472_v7, -1e+30 }
 0x163   : > { %476 = vmax.xlane.f32.xlu1 %v474_v8  ;;  %v498_v17 = vsel %vm456_vm5, %v474_v8, 0.0 }
 0x1d6   : > { %v477_v10 = vpop.xlane.xlu1 %476 }
 0x1d7   : > { %v478_v11 = vmax.f32 %v475_v9, %v477_v10 }
 0x1d9   : > { %v479_v12 = vsub.f32 %v475_v9, %v478_v11  ;;  %503 = vst.msk [vmem:[%s874_s25] sm:$0xff] %vm358_vm6, %v478_v11  ;;  %486 = vperm.xlu1 %719, %v478_v11  }
 0x1db   : > { %v480_v18 = vmul.f32 1.442695, %v479_v12 }
 0x24b   : > { %v487_v13 = vpop.permute.xlu1 %486 }
 0x24c   : > { %v489_v14 = vsub.f32 %v474_v8, %v487_v13 }
 0x24e   : > { %v490_v15 = vmul.f32 1.442695, %v489_v14 }
 0x250   : > { %724 = vpow2.f32 %v490_v15 }
 0x251   : > { %726 = vpow2.f32 %v480_v18 }
 0x256   : > { %v725_v16 = vpop.eup %724 }
 0x257   : > { %492 = vadd.xlane.f32.xlu2 %v725_v16  ;;  %v727_v19 = vpop.eup %726 }
 0x258   : > { %v483_v21 = vmul.f32 %v727_v19, %v482_v20 }
 0x25f   : > { %499 = vadd.xlane.f32.xlu2 %v498_v17 }
 0x2ca   : > { %v493_v22 = vpop.xlane.xlu2 %492 }
 0x2cb   : > { %v494_v23 = vadd.f32 %v493_v22, %v483_v21 }
 0x2cd   : > { %496 = vst.msk [vmem:[%s882_s28] sm:$0xff] %vm358_vm6, %v494_v23 }
 0x2d2   : > { %v500_v25 = vpop.xlane.xlu2 %499 }
 0x2d3   : > { %v501_v26 = vadd.f32 %v500_v25, %v497_v24 }
 0x2d5   : > { %502 = vst.msk [vmem:[%s330_s6] sm:$0xff] %vm358_vm6, %v501_v26 }
 0x2d6 PF: > { %s16_s22 = sadd.s32 1, %s766_s22   ;;  %s923_s18 = smov %s754_s19 }
 0x2d7   : > { %p13_p10 = scmp.ge.s32.totalorder %s16_s22, 4   ;;  %s924_s19 = smov %s836_s26 }
 0x2d8   : > { %s925_s20 = smov %s762_s21  ;;  %s926_s21 = smov %s928_s23 }
 0x2d9   :  { %15 = sbr.rel (!%p13_p10) target bundleno = 3 (0x3), region = 137 }

// kernel: arcface_loss.2
= control target key start
LH: loop header
LB: loop body
LE: loop exit
PB: predicated region body
PF: predicated region fallthrough
CT: control target
= control target key end

     0   :  { %s894_s6 = smov 0   ;;  %s896_s7 = smov 0   ;;  %s1412_s0 = inlined_call_operand.vmem [shape: f32[2,182,32], index: 0, kind: input, shape index: {}]   ;;  %s1413_s1 = inlined_call_operand.vmem [shape: bf16[2,182,32], index: 1, kind: output, shape index: {}]  }
   0x1   :  { %s898_s8 = smov 0  }
   0x2 LB: > { %s23_s9 = sadd.s32 1, %s878_s7  ;;  %p783_p0 = scmp.ge.s32.totalorder %s882_s8, 1  ;;  %s882_s8 = sphi %s898_s8, %s11_s8   ;;  %s878_s7 = sphi %s896_s7, %s1415_s7   ;;  %s874_s6 = sphi %s894_s6, %s1414_s6  }
   0x3   : > { %p25_p1 = scmp.ge.s32.totalorder %s23_s9, 2  ;;  %p108_p2 = scmp.lt.s32.totalorder %s882_s8, 3 }
   0x5   : > { %s1417_s9 = smov (%p25_p1, %s23_s9), 0  ;;  %p109_p3 = pnand %p783_p0, %p108_p2 }
   0x6   : > { %p137_p4 = scmp.lt.s32.totalorder (!%p109_p3), %s874_s6, 1 }
   0x7   : > { %112 = sbr.rel (%p109_p3) target bundleno = 221 (0xdd), region = 24 }
   0xc   : > { %s1419_s6 = smov (!%p137_p4, %s874_s6), 1  ;;  %vm269_vm0 = vcmask 259072   ;;  %vm202_vm1 = vcmask 261120   ;;  %vm690_vm3 = vcmask 256000   ;;  %vm667_vm7 = vcmask 257024  }
   0xd   : > { %s788_s10 = smul.u32 184, %s1419_s6 }
   0xe   : > { %s789_s14 = smul.u32 92, %s1419_s6 }
   0xf   : > { %s918_s13 = scalar_lea.vmem %s1412_s0, %s788_s10 }
  0x10   : > { %v921_v0 = vld [vmem:[%s918_s13 + $0xb0] sm:$0x3f]  ;;  %v924_v1 = vld [vmem:[%s918_s13 + $0x18] sm:$0xff]  ;;  %v927_v2 = vld [vmem:[%s918_s13] sm:$0xff]  ;;  %s1106_s17 = scalar_lea.vmem %s1413_s1, %s789_s14 }
  0x11   : > { %v201_v3 = vmul.f32 %v921_v0, %v921_v0  ;;  %v182_v4 = vmul.f32 %v924_v1, %v924_v1  ;;  %v179_v5 = vmul.f32 %v927_v2, %v927_v2  ;;  %v936_v6 = vld [vmem:[%s918_s13 + $0x20] sm:$0xff]  ;;  %v939_v7 = vld [vmem:[%s918_s13 + $0x10] sm:$0xff]  ;;  %v944_v11 = vld [vmem:[%s918_s13 + $0x8] sm:$0xff] }
  0x12   : > { %v183_v12 = vmul.f32 %v936_v6, %v936_v6  ;;  %v181_v13 = vmul.f32 %v939_v7, %v939_v7  ;;  %v180_v14 = vmul.f32 %v944_v11, %v944_v11  ;;  %v956_v18 = vld [vmem:[%s918_s13 + $0x38] sm:$0xff]  ;;  %v959_v19 = vld [vmem:[%s918_s13 + $0x30] sm:$0xff]  ;;  %v962_v20 = vld [vmem:[%s918_s13 + $0x28] sm:$0xff] }
  0x13   : > { %v270_v8 = vsel %vm269_vm0, %v201_v3, 0.0  ;;  %v212_v9 = vsel %vm202_vm1, %v182_v4, 0.0  ;;  %v203_v10 = vsel %vm202_vm1, %v179_v5, 0.0  ;;  %v186_v21 = vmul.f32 %v956_v18, %v956_v18  ;;  %v974_v27 = vld [vmem:[%s918_s13 + $0x50] sm:$0xff]  ;;  %v977_v28 = vld [vmem:[%s918_s13 + $0x48] sm:$0xff]  ;;  %v980_v29 = vld [vmem:[%s918_s13 + $0x40] sm:$0xff] }
  0x14   : > { %271 = vadd.xlane.f32.xlu1 %v270_v8  ;;  %213 = vadd.xlane.f32.xlu2 %v212_v9  ;;  %v215_v15 = vsel %vm202_vm1, %v183_v12, 0.0  ;;  %v209_v16 = vsel %vm202_vm1, %v181_v13, 0.0  ;;  %v206_v17 = vsel %vm202_vm1, %v180_v14, 0.0  ;;  %v185_v22 = vmul.f32 %v959_v19, %v959_v19  ;;  %v992_v36 = vld [vmem:[%s918_s13 + $0x68] sm:$0xff]  ;;  %v995_v37 = vld [vmem:[%s918_s13 + $0x60] sm:$0xff]  ;;  %v998_v38 = vld [vmem:[%s918_s13 + $0x58] sm:$0xff] }
  0x15   : > { %204 = vadd.xlane.f32.xlu0 %v203_v10  ;;  %v184_v23 = vmul.f32 %v962_v20, %v962_v20  ;;  %v224_v24 = vsel %vm202_vm1, %v186_v21, 0.0  ;;  %v189_v30 = vmul.f32 %v974_v27, %v974_v27  ;;  %v188_v31 = vmul.f32 %v977_v28, %v977_v28  ;;  %v1010_v45 = vld [vmem:[%s918_s13 + $0x80] sm:$0xff]  ;;  %v1013_v46 = vld [vmem:[%s918_s13 + $0x78] sm:$0xff]  ;;  %v1016_v47 = vld [vmem:[%s918_s13 + $0x70] sm:$0xff] }
  0x16   : > { %v221_v25 = vsel %vm202_vm1, %v185_v22, 0.0  ;;  %v187_v32 = vmul.f32 %v980_v29, %v980_v29  ;;  %v192_v39 = vmul.f32 %v992_v36, %v992_v36  ;;  %v191_v40 = vmul.f32 %v995_v37, %v995_v37  ;;  %v1028_v54 = vld [vmem:[%s918_s13 + $0x98] sm:$0xff]  ;;  %v1031_v55 = vld [vmem:[%s918_s13 + $0x90] sm:$0xff]  ;;  %v1034_v56 = vld [vmem:[%s918_s13 + $0x88] sm:$0xff] }
  0x17   : > { %v218_v26 = vsel %vm202_vm1, %v184_v23, 0.0  ;;  %v233_v33 = vsel %vm202_vm1, %v189_v30, 0.0  ;;  %v230_v34 = vsel %vm202_vm1, %v188_v31, 0.0  ;;  %v190_v41 = vmul.f32 %v998_v38, %v998_v38  ;;  %v1046_v63 = vld [vmem:[%s918_s13 + $0xa8] sm:$0xff]  ;;  %v1049_v3 = vld [vmem:[%s918_s13 + $0xa0] sm:$0xff] }
  0x18   : > { %v227_v35 = vsel %vm202_vm1, %v187_v32, 0.0  ;;  %v242_v42 = vsel %vm202_vm1, %v192_v39, 0.0  ;;  %v239_v43 = vsel %vm202_vm1, %v191_v40, 0.0  ;;  %v195_v48 = vmul.f32 %v1010_v45, %v1010_v45 }
  0x19   : > { %v236_v44 = vsel %vm202_vm1, %v190_v41, 0.0  ;;  %v194_v49 = vmul.f32 %v1013_v46, %v1013_v46  ;;  %v193_v50 = vmul.f32 %v1016_v47, %v1016_v47  ;;  %v198_v57 = vmul.f32 %v1028_v54, %v1028_v54 }
  0x1a   : > { %v251_v51 = vsel %vm202_vm1, %v195_v48, 0.0  ;;  %v197_v58 = vmul.f32 %v1031_v55, %v1031_v55  ;;  %v196_v59 = vmul.f32 %v1034_v56, %v1034_v56  ;;  %v200_v4 = vmul.f32 %v1046_v63, %v1046_v63 }
  0x1b   : > { %v248_v52 = vsel %vm202_vm1, %v194_v49, 0.0  ;;  %v245_v53 = vsel %vm202_vm1, %v193_v50, 0.0  ;;  %v260_v60 = vsel %vm202_vm1, %v198_v57, 0.0  ;;  %v199_v5 = vmul.f32 %v1049_v3, %v1049_v3 }
  0x1c   : > { %216 = vadd.xlane.f32.xlu2 %v215_v15  ;;  %210 = vadd.xlane.f32.xlu1 %v209_v16  ;;  %v257_v61 = vsel %vm202_vm1, %v197_v58, 0.0  ;;  %v254_v62 = vsel %vm202_vm1, %v196_v59, 0.0  ;;  %v266_v8 = vsel %vm202_vm1, %v200_v4, 0.0 }
  0x1d   : > { %207 = vadd.xlane.f32.xlu0 %v206_v17  ;;  %v263_v9 = vsel %vm202_vm1, %v199_v5, 0.0  ;;  %v526_v17 = vlaneseq }
  0x1f   : > { %v527_v21 = vshrl.u32 %v526_v17, 7 }
  0x24   : > { %225 = vadd.xlane.f32.xlu2 %v224_v24  ;;  %222 = vadd.xlane.f32.xlu1 %v221_v25 }
  0x25   : > { %219 = vadd.xlane.f32.xlu0 %v218_v26 }
  0x2c   : > { %234 = vadd.xlane.f32.xlu2 %v233_v33  ;;  %231 = vadd.xlane.f32.xlu1 %v230_v34 }
  0x2d   : > { %228 = vadd.xlane.f32.xlu0 %v227_v35  ;;  %v549_v35 = vadd.s32 176, %v527_v21 }
  0x2f   : > { %vm597_vm2 = vcmp.lt.s32.totalorder %v549_v35, 182 }
  0x34   : > { %243 = vadd.xlane.f32.xlu2 %v242_v42  ;;  %240 = vadd.xlane.f32.xlu1 %v239_v43 }
  0x35   : > { %237 = vadd.xlane.f32.xlu0 %v236_v44 }
  0x3c   : > { %252 = vadd.xlane.f32.xlu2 %v251_v51  ;;  %249 = vadd.xlane.f32.xlu1 %v248_v52 }
  0x3d   : > { %246 = vadd.xlane.f32.xlu0 %v245_v53 }
  0x44   : > { %261 = vadd.xlane.f32.xlu2 %v260_v60  ;;  %258 = vadd.xlane.f32.xlu1 %v257_v61 }
  0x45   : > { %255 = vadd.xlane.f32.xlu0 %v254_v62 }
  0x4c   : > { %267 = vadd.xlane.f32.xlu1 %v266_v8 }
  0x4d   : > { %264 = vadd.xlane.f32.xlu0 %v263_v9 }
  0x87   : > { %v272_v10 = vpop.xlane.xlu1 %271  ;;  %v214_v12 = vpop.xlane.xlu2 %213 }
  0x88   : > { %v295_v13 = vmax.f32 %v272_v10, 1e-24  ;;  %v276_v14 = vmax.f32 %v214_v12, 1e-24  ;;  %v205_v15 = vpop.xlane.xlu0 %204 }
  0x89   : > { %v1057_v16 = vmax.f32 %v205_v15, 1e-24 }
  0x8a   : > { %814 = vrsqrt.f32 %v295_v13  ;;  %vm522_vm4 = vweird.f32 %v295_v13  ;;  %vm332_vm5 = vweird.f32 %v276_v14 }
  0x8b   : > { %816 = vrsqrt.f32 %v276_v14  ;;  %vm302_vm8 = vweird.f32 %v1057_v16 }
  0x8c   : > { %818 = vrsqrt.f32 %v1057_v16 }
  0x8f   : > { %v217_v22 = vpop.xlane.xlu2 %216  ;;  %v211_v23 = vpop.xlane.xlu1 %210 }
  0x90   : > { %v815_v24 = vpop.eup %814  ;;  %v1060_v25 = vmax.f32 %v217_v22, 1e-24  ;;  %v1062_v26 = vmax.f32 %v211_v23, 1e-24  ;;  %v208_v30 = vpop.xlane.xlu0 %207 }
  0x91   : > { %v817_v31 = vpop.eup %816  ;;  %v517_v32 = vmul.f32 %v815_v24, %v295_v13  ;;  %v1064_v33 = vmax.f32 %v208_v30, 1e-24  ;;  %vm523_vm6 = vweird.f32 %v815_v24 }
  0x92   : > { %v819_v34 = vpop.eup %818  ;;  %v327_v39 = vmul.f32 %v817_v31, %v276_v14  ;;  %820 = vrsqrt.f32 %v1060_v25  ;;  %vm333_vm9 = vweird.f32 %v817_v31  ;;  %vm342_vm10 = vweird.f32 %v1060_v25  ;;  %vm524_vm12 = vmor %vm522_vm4, %vm523_vm6 }
  0x93   : > { %v518_v40 = vmul.f32 %v815_v24, %v517_v32  ;;  %v297_v41 = vmul.f32 %v819_v34, %v1057_v16  ;;  %822 = vrsqrt.f32 %v1062_v26  ;;  %vm303_vm11 = vweird.f32 %v819_v34  ;;  %vm334_vm14 = vmor %vm332_vm5, %vm333_vm9 }
  0x94   : > { %v328_v42 = vmul.f32 %v817_v31, %v327_v39  ;;  %824 = vrsqrt.f32 %v1064_v33  ;;  %vm322_vm13 = vweird.f32 %v1062_v26  ;;  %vm304_vm15 = vmor %vm302_vm8, %vm303_vm11  ;;  %vm312_vm5 = vweird.f32 %v1064_v33 }
  0x95   : > { %v519_v43 = vmul.f32 0.5, %v518_v40  ;;  %v298_v44 = vmul.f32 %v819_v34, %v297_v41 }
  0x96   : > { %v329_v48 = vmul.f32 0.5, %v328_v42 }
  0x97   : > { %v520_v49 = vsub.f32 1.5, %v519_v43  ;;  %v299_v50 = vmul.f32 0.5, %v298_v44  ;;  %v226_v51 = vpop.xlane.xlu2 %225  ;;  %v223_v52 = vpop.xlane.xlu1 %222 }
  0x98   : > { %v1071_v53 = vpop.eup %820  ;;  %v330_v57 = vsub.f32 1.5, %v329_v48  ;;  %v1074_v58 = vmax.f32 %v226_v51, 1e-24  ;;  %v220_v59 = vpop.xlane.xlu0 %219  ;;  %v1099_v23 = vmax.f32 %v223_v52, 1e-24 }
  0x99   : > { %v1076_v60 = vpop.eup %822  ;;  %v521_v61 = vmul.f32 %v815_v24, %v520_v49  ;;  %v300_v62 = vsub.f32 1.5, %v299_v50  ;;  %v337_v4 = vmul.f32 %v1071_v53, %v1060_v25  ;;  %vm343_vm0 = vweird.f32 %v1071_v53 }
  0x9a   : > { %v1080_v5 = vpop.eup %824  ;;  %v331_v8 = vmul.f32 %v817_v31, %v330_v57  ;;  %v317_v9 = vmul.f32 %v1076_v60, %v1062_v26  ;;  %826 = vrsqrt.f32 %v1074_v58  ;;  %vm323_vm1 = vweird.f32 %v1076_v60  ;;  %vm344_vm4 = vmor %vm342_vm10, %vm343_vm0 }
  0x9b   : > { %v525_v10 = vsel %vm524_vm12, %v815_v24, %v521_v61  ;;  %v301_v12 = vmul.f32 %v819_v34, %v300_v62  ;;  %v338_v15 = vmul.f32 %v1071_v53, %v337_v4  ;;  %v307_v17 = vmul.f32 %v1080_v5, %v1064_v33 }
  0x9c   : > { %v620_v13 = vmul.f32 %v525_v10, %v921_v0  ;;  %v335_v21 = vsel %vm334_vm14, %v817_v31, %v331_v8  ;;  %v318_v22 = vmul.f32 %v1076_v60, %v317_v9  ;;  %828 = vrsqrt.f32 %v1099_v23 }
  0x9d   : > { %v601_v14 = vmul.f32 %v335_v21, %v924_v1  ;;  %v305_v24 = vsel %vm304_vm15, %v819_v34, %v301_v12  ;;  %v339_v30 = vmul.f32 0.5, %v338_v15  ;;  %v308_v32 = vmul.f32 %v1080_v5, %v307_v17 }
  0x9e   : > { %v643_v0 = vsel %vm597_vm2, %v620_v13, 0.0  ;;  %v598_v16 = vmul.f32 %v305_v24, %v927_v2  ;;  %v319_v31 = vmul.f32 0.5, %v318_v22  ;;  %vm313_vm2 = vweird.f32 %v1080_v5 }
  0x9f   : > { %v666_v39 = vpack.c.bf16 %v643_v0, %v643_v0  ;;  %v647_v40 = vpack.c.bf16 %v601_v14, %v601_v14  ;;  %v340_v1 = vsub.f32 1.5, %v339_v30  ;;  %v309_v34 = vmul.f32 0.5, %v308_v32  ;;  %v235_v41 = vpop.xlane.xlu2 %234  ;;  %v232_v42 = vpop.xlane.xlu1 %231  ;;  %vm314_vm6 = vmor %vm312_vm5, %vm313_vm2 }
  0xa0   : > { %v1111_v43 = vpop.eup %826  ;;  %v644_v44 = vpack.c.bf16 %v598_v16, %v598_v16  ;;  %v320_v48 = vsub.f32 1.5, %v319_v31  ;;  %v229_v2 = vpop.xlane.xlu0 %228  ;;  %v1129_v52 = vmax.f32 %v220_v59, 1e-24  ;;  %v1131_v57 = vmax.f32 %v235_v41, 1e-24 }
  0xa1   : > { %691 = vst.msk [vmem:[%s1106_s17 + $0x58] sm:$0x7] %vm690_vm3, %v666_v39  ;;  %v341_v35 = vmul.f32 %v1071_v53, %v340_v1  ;;  %v310_v49 = vsub.f32 1.5, %v309_v34  ;;  %v367_v50 = vmul.f32 %v1111_v43, %v1074_v58  ;;  %vm324_vm3 = vmor %vm322_vm13, %vm323_vm1  ;;  %v1142_v4 = vmax.f32 %v232_v42, 1e-24 }
  0xa2   : > { %671 = vst.msk [vmem:[%s1106_s17 + $0xc] sm:$0xf] %vm667_vm7, %v647_v40  ;;  %v321_v51 = vmul.f32 %v1076_v60, %v320_v48  ;;  %830 = vrsqrt.f32 %v1129_v52  ;;  %v1152_v9 = vpop.eup %828  ;;  %vm372_vm8 = vweird.f32 %v1074_v58  ;;  %vm373_vm9 = vweird.f32 %v1111_v43 }
  0xa3   : > { %668 = vst.msk [vmem:[%s1106_s17] sm:$0xf] %vm667_vm7, %v644_v44  ;;  %v345_v61 = vsel %vm344_vm4, %v1071_v53, %v341_v35  ;;  %v311_v25 = vmul.f32 %v1080_v5, %v310_v49  ;;  %v368_v62 = vmul.f32 %v1111_v43, %v367_v50  ;;  %832 = vrsqrt.f32 %v1131_v57  ;;  %vm374_vm10 = vmor %vm372_vm8, %vm373_vm9 }
  0xa4   : > { %v602_v33 = vmul.f32 %v345_v61, %v936_v6  ;;  %v325_v59 = vsel %vm324_vm3, %v1076_v60, %v321_v51  ;;  %834 = vrsqrt.f32 %v1142_v4  ;;  %v1162_v13 = vmax.f32 %v229_v2, 1e-24 }
  0xa5   : > { %v600_v53 = vmul.f32 %v325_v59, %v939_v7  ;;  %v315_v26 = vsel %vm314_vm6, %v1080_v5, %v311_v25  ;;  %v369_v8 = vmul.f32 0.5, %v368_v62  ;;  %v357_v7 = vmul.f32 %v1152_v9, %v1099_v23 }
  0xa6   : > { %v648_v10 = vpack.c.bf16 %v602_v33, %v602_v33  ;;  %v599_v6 = vmul.f32 %v315_v26, %v944_v11  ;;  %vm362_vm11 = vweird.f32 %v1099_v23  ;;  %836 = vrsqrt.f32 %v1162_v13 }
  0xa7   : > { %v646_v60 = vpack.c.bf16 %v600_v53, %v600_v53  ;;  %v370_v12 = vsub.f32 1.5, %v369_v8  ;;  %v244_v5 = vpop.xlane.xlu2 %243  ;;  %v241_v15 = vpop.xlane.xlu1 %240  ;;  %v358_v14 = vmul.f32 %v1152_v9, %v357_v7  ;;  %vm352_vm12 = vweird.f32 %v1129_v52 }
  0xa8   : > { %672 = vst.msk [vmem:[%s1106_s17 + $0x10] sm:$0xf] %vm667_vm7, %v648_v10  ;;  %v645_v17 = vpack.c.bf16 %v599_v6, %v599_v6  ;;  %v1164_v11 = vmax.f32 %v244_v5, 1e-24  ;;  %v238_v21 = vpop.xlane.xlu0 %237  ;;  %v1170_v24 = vpop.eup %830  ;;  %v1178_v30 = vmax.f32 %v241_v15, 1e-24  ;;  %vm402_vm13 = vweird.f32 %v1131_v57 }
  0xa9   : > { %670 = vst.msk [vmem:[%s1106_s17 + $0x8] sm:$0xf] %vm667_vm7, %v646_v60  ;;  %v371_v22 = vmul.f32 %v1111_v43, %v370_v12  ;;  %v1180_v32 = vpop.eup %832  ;;  %v359_v16 = vmul.f32 0.5, %v358_v14  ;;  %v347_v31 = vmul.f32 %v1170_v24, %v1129_v52  ;;  %v1186_v39 = vmax.f32 %v238_v21, 1e-24 }
  0xaa   : > { %669 = vst.msk [vmem:[%s1106_s17 + $0x4] sm:$0xf] %vm667_vm7, %v645_v17  ;;  %v1188_v58 = vpop.eup %834  ;;  %v397_v1 = vmul.f32 %v1180_v32, %v1131_v57  ;;  %838 = vrsqrt.f32 %v1164_v11  ;;  %vm363_vm14 = vweird.f32 %v1152_v9  ;;  %vm392_vm15 = vweird.f32 %v1142_v4 }
  0xab   : > { %v375_v0 = vsel %vm374_vm10, %v1111_v43, %v371_v22  ;;  %v360_v34 = vsub.f32 1.5, %v359_v16  ;;  %v348_v41 = vmul.f32 %v1170_v24, %v347_v31  ;;  %v387_v42 = vmul.f32 %v1188_v58, %v1142_v4  ;;  %vm364_vm0 = vmor %vm362_vm11, %vm363_vm14 }
  0xac   : > { %v605_v40 = vmul.f32 %v375_v0, %v956_v18  ;;  %v398_v44 = vmul.f32 %v1180_v32, %v397_v1  ;;  %840 = vrsqrt.f32 %v1178_v30  ;;  %v1207_v50 = vpop.eup %836  ;;  %vm353_vm1 = vweird.f32 %v1170_v24 }
  0xad   : > { %v361_v18 = vmul.f32 %v1152_v9, %v360_v34  ;;  %v349_v48 = vmul.f32 0.5, %v348_v41  ;;  %v388_v2 = vmul.f32 %v1188_v58, %v387_v42  ;;  %842 = vrsqrt.f32 %v1186_v39  ;;  %vm354_vm5 = vmor %vm352_vm12, %vm353_vm1 }
  0xae   : > { %v651_v43 = vpack.c.bf16 %v605_v40, %v605_v40  ;;  %v399_v51 = vmul.f32 0.5, %v398_v44  ;;  %vm403_vm2 = vweird.f32 %v1180_v32  ;;  %v377_v53 = vmul.f32 %v1207_v50, %v1162_v13 }
  0xaf   : > { %v253_v35 = vpop.xlane.xlu2 %252  ;;  %v1205_v49 = vpop.xlane.xlu1 %249  ;;  %v365_v62 = vsel %vm364_vm0, %v1152_v9, %v361_v18  ;;  %v350_v33 = vsub.f32 1.5, %v349_v48  ;;  %v389_v59 = vmul.f32 0.5, %v388_v2  ;;  %vm393_vm4 = vweird.f32 %v1188_v58  ;;  %vm404_vm8 = vmor %vm402_vm13, %vm403_vm2 }
  0xb0   : > { %675 = vst.msk [vmem:[%s1106_s17 + $0x1c] sm:$0xf] %vm667_vm7, %v651_v43  ;;  %v1217_v61 = vmax.f32 %v253_v35, 1e-24  ;;  %v1219_v25 = vpop.xlane.xlu0 %246  ;;  %v1224_v26 = vpop.eup %838  ;;  %v604_v23 = vmul.f32 %v365_v62, %v959_v19  ;;  %v400_v8 = vsub.f32 1.5, %v399_v51  ;;  %v378_v9 = vmul.f32 %v1207_v50, %v377_v53  ;;  %vm394_vm9 = vmor %vm392_vm15, %vm393_vm4 }
  0xb1   : > { %v351_v10 = vmul.f32 %v1170_v24, %v350_v33  ;;  %v390_v6 = vsub.f32 1.5, %v389_v59  ;;  %v427_v60 = vmul.f32 %v1224_v26, %v1164_v11  ;;  %vm382_vm3 = vweird.f32 %v1162_v13 }
  0xb2   : > { %844 = vrsqrt.f32 %v1217_v61  ;;  %v1233_v12 = vpop.eup %840  ;;  %v650_v7 = vpack.c.bf16 %v604_v23, %v604_v23  ;;  %v401_v19 = vmul.f32 %v1180_v32, %v400_v8  ;;  %vm432_vm6 = vweird.f32 %v1164_v11 }
  0xb3   : > { %v1242_v5 = vpop.eup %842  ;;  %v355_v15 = vsel %vm354_vm5, %v1170_v24, %v351_v10  ;;  %v391_v17 = vmul.f32 %v1188_v58, %v390_v6  ;;  %v379_v21 = vmul.f32 0.5, %v378_v9  ;;  %v428_v52 = vmul.f32 %v1224_v26, %v427_v60 }
  0xb4   : > { %674 = vst.msk [vmem:[%s1106_s17 + $0x18] sm:$0xf] %vm667_vm7, %v650_v7  ;;  %v603_v22 = vmul.f32 %v355_v15, %v962_v20  ;;  %v405_v14 = vsel %vm404_vm8, %v1180_v32, %v401_v19  ;;  %vm383_vm10 = vweird.f32 %v1207_v50  ;;  %v417_v57 = vmul.f32 %v1233_v12, %v1178_v30 }
  0xb5   : > { %vm422_vm11 = vweird.f32 %v1178_v30  ;;  %v608_v24 = vmul.f32 %v405_v14, %v974_v27  ;;  %v395_v0 = vsel %vm394_vm9, %v1188_v58, %v391_v17  ;;  %v380_v20 = vsub.f32 1.5, %v379_v21  ;;  %vm384_vm14 = vmor %vm382_vm3, %vm383_vm10 }
  0xb6   : > { %v429_v16 = vmul.f32 0.5, %v428_v52  ;;  %v649_v40 = vpack.c.bf16 %v603_v22, %v603_v22  ;;  %v607_v4 = vmul.f32 %v395_v0, %v977_v28  ;;  %v418_v1 = vmul.f32 %v1233_v12, %v417_v57 }
  0xb7   : > { %v259_v32 = vpop.xlane.xlu1 %258  ;;  %v407_v34 = vmul.f32 %v1242_v5, %v1186_v39  ;;  %vm412_vm12 = vweird.f32 %v1186_v39  ;;  %v654_v41 = vpack.c.bf16 %v608_v24, %v608_v24  ;;  %v381_v27 = vmul.f32 %v1207_v50, %v380_v20  ;;  %v262_v33 = vpop.xlane.xlu2 %261 }
  0xb8   : > { %v1265_v31 = vpop.eup %844  ;;  %v430_v58 = vsub.f32 1.5, %v429_v16  ;;  %vm433_vm13 = vweird.f32 %v1224_v26  ;;  %673 = vst.msk [vmem:[%s1106_s17 + $0x14] sm:$0xf] %vm667_vm7, %v649_v40  ;;  %v653_v42 = vpack.c.bf16 %v607_v4, %v607_v4  ;;  %v419_v28 = vmul.f32 0.5, %v418_v1  ;;  %v256_v18 = vpop.xlane.xlu0 %255 }
  0xb9   : > { %v408_v43 = vmul.f32 %v1242_v5, %v407_v34  ;;  %v457_v44 = vmul.f32 %v1265_v31, %v1217_v61  ;;  %678 = vst.msk [vmem:[%s1106_s17 + $0x28] sm:$0xf] %vm667_vm7, %v654_v41  ;;  %v385_v48 = vsel %vm384_vm14, %v1207_v50, %v381_v27  ;;  %vm423_vm15 = vweird.f32 %v1233_v12  ;;  %vm434_vm0 = vmor %vm432_vm6, %vm433_vm13 }
  0xba   : > { %v431_v2 = vmul.f32 %v1224_v26, %v430_v58  ;;  %v1289_v35 = vmax.f32 %v1205_v49, 1e-24  ;;  %677 = vst.msk [vmem:[%s1106_s17 + $0x24] sm:$0xf] %vm667_vm7, %v653_v42  ;;  %v606_v13 = vmul.f32 %v385_v48, %v980_v29  ;;  %v420_v51 = vsub.f32 1.5, %v419_v28  ;;  %vm424_vm2 = vmor %vm422_vm11, %vm423_vm15 }
  0xbb   : > { %v409_v62 = vmul.f32 0.5, %v408_v43  ;;  %v458_v50 = vmul.f32 %v1265_v31, %v457_v44  ;;  %vm413_vm1 = vweird.f32 %v1242_v5  ;;  %v1303_v49 = vmax.f32 %v1219_v25, 1e-24 }
  0xbc   : > { %v435_v59 = vsel %vm434_vm0, %v1224_v26, %v431_v2  ;;  %846 = vrsqrt.f32 %v1289_v35  ;;  %v652_v29 = vpack.c.bf16 %v606_v13, %v606_v13  ;;  %v421_v11 = vmul.f32 %v1233_v12, %v420_v51  ;;  %vm414_vm5 = vmor %vm412_vm12, %vm413_vm1 }
  0xbd   : > { %v611_v53 = vmul.f32 %v435_v59, %v992_v36  ;;  %v410_v23 = vsub.f32 1.5, %v409_v62  ;;  %v459_v26 = vmul.f32 0.5, %v458_v50  ;;  %vm462_vm4 = vweird.f32 %v1217_v61 }
  0xbe   : > { %848 = vrsqrt.f32 %v1303_v49  ;;  %v1313_v8 = vmax.f32 %v262_v33, 1e-24  ;;  %676 = vst.msk [vmem:[%s1106_s17 + $0x20] sm:$0xf] %vm667_vm7, %v652_v29  ;;  %v425_v36 = vsel %vm424_vm2, %v1233_v12, %v421_v11  ;;  %v1319_v6 = vmax.f32 %v259_v32, 1e-24 }
  0xbf   : > { %v657_v25 = vpack.c.bf16 %v611_v53, %v611_v53  ;;  %v411_v10 = vmul.f32 %v1242_v5, %v410_v23  ;;  %v268_v9 = vpop.xlane.xlu1 %267  ;;  %v610_v30 = vmul.f32 %v425_v36, %v995_v37  ;;  %v460_v60 = vsub.f32 1.5, %v459_v26 }
  0xc0   : > { %vm463_vm3 = vweird.f32 %v1265_v31  ;;  %850 = vrsqrt.f32 %v1313_v8  ;;  %v1332_v7 = vmax.f32 %v256_v18, 1e-24  ;;  %v1336_v17 = vmax.f32 %v268_v9, 1e-24 }
  0xc1   : > { %681 = vst.msk [vmem:[%s1106_s17 + $0x34] sm:$0xf] %vm667_vm7, %v657_v25  ;;  %v415_v12 = vsel %vm414_vm5, %v1242_v5, %v411_v10  ;;  %852 = vrsqrt.f32 %v1319_v6  ;;  %v656_v19 = vpack.c.bf16 %v610_v30, %v610_v30  ;;  %v461_v39 = vmul.f32 %v1265_v31, %v460_v60  ;;  %vm464_vm6 = vmor %vm462_vm4, %vm463_vm3  ;;  %v265_v5 = vpop.xlane.xlu0 %264 }
  0xc2   : > { %v847_v37 = vpop.eup %846  ;;  %v609_v15 = vmul.f32 %v415_v12, %v998_v38  ;;  %854 = vrsqrt.f32 %v1332_v7  ;;  %vm452_vm8 = vweird.f32 %v1289_v35  ;;  %vm442_vm9 = vweird.f32 %v1303_v49 }
  0xc3   : > { %v447_v21 = vmul.f32 %v847_v37, %v1289_v35  ;;  %680 = vst.msk [vmem:[%s1106_s17 + $0x30] sm:$0xf] %vm667_vm7, %v656_v19  ;;  %v465_v14 = vsel %vm464_vm6, %v1265_v31, %v461_v39  ;;  %856 = vrsqrt.f32 %v1336_v17  ;;  %v1352_v0 = vmax.f32 %v265_v5, 1e-24 }
  0xc4   : > { %v849_v52 = vpop.eup %848  ;;  %v655_v22 = vpack.c.bf16 %v609_v15, %v609_v15  ;;  %v614_v38 = vmul.f32 %v465_v14, %v1010_v45  ;;  %vm492_vm10 = vweird.f32 %v1313_v8  ;;  %vm482_vm11 = vweird.f32 %v1319_v6 }
  0xc5   : > { %v448_v57 = vmul.f32 %v847_v37, %v447_v21  ;;  %v437_v24 = vmul.f32 %v849_v52, %v1303_v49  ;;  %858 = vrsqrt.f32 %v1352_v0  ;;  %vm453_vm12 = vweird.f32 %v847_v37 }
  0xc6   : > { %v851_v61 = vpop.eup %850  ;;  %679 = vst.msk [vmem:[%s1106_s17 + $0x2c] sm:$0xf] %vm667_vm7, %v655_v22  ;;  %v660_v16 = vpack.c.bf16 %v614_v38, %v614_v38  ;;  %vm443_vm13 = vweird.f32 %v849_v52  ;;  %vm472_vm14 = vweird.f32 %v1332_v7  ;;  %vm454_vm15 = vmor %vm452_vm8, %vm453_vm12  ;;  %vm502_vm12 = vweird.f32 %v1352_v0 }
  0xc7   : > { %v853_v20 = vpop.eup %852  ;;  %v449_v32 = vmul.f32 0.5, %v448_v57  ;;  %v438_v31 = vmul.f32 %v849_v52, %v437_v24  ;;  %v487_v40 = vmul.f32 %v851_v61, %v1313_v8  ;;  %vm493_vm0 = vweird.f32 %v851_v61  ;;  %vm444_vm2 = vmor %vm442_vm9, %vm443_vm13 }
  0xc8   : > { %v477_v45 = vmul.f32 %v853_v20, %v1319_v6  ;;  %v855_v4 = vpop.eup %854  ;;  %684 = vst.msk [vmem:[%s1106_s17 + $0x40] sm:$0xf] %vm667_vm7, %v660_v16  ;;  %vm483_vm1 = vweird.f32 %v853_v20  ;;  %vm494_vm5 = vmor %vm492_vm10, %vm493_vm0  ;;  %vm512_vm9 = vweird.f32 %v1336_v17 }
  0xc9   : > { %v450_v1 = vsub.f32 1.5, %v449_v32  ;;  %v439_v34 = vmul.f32 0.5, %v438_v31  ;;  %v488_v41 = vmul.f32 %v851_v61, %v487_v40  ;;  %v857_v27 = vpop.eup %856  ;;  %v467_v42 = vmul.f32 %v855_v4, %v1332_v7  ;;  %vm484_vm3 = vmor %vm482_vm11, %vm483_vm1 }
  0xca   : > { %v478_v58 = vmul.f32 %v853_v20, %v477_v45  ;;  %v507_v18 = vmul.f32 %v857_v27, %v1336_v17  ;;  %vm473_vm4 = vweird.f32 %v855_v4  ;;  %vm513_vm6 = vweird.f32 %v857_v27 }
  0xcb   : > { %v451_v28 = vmul.f32 %v847_v37, %v450_v1  ;;  %v440_v43 = vsub.f32 1.5, %v439_v34  ;;  %v489_v44 = vmul.f32 0.5, %v488_v41  ;;  %v468_v2 = vmul.f32 %v855_v4, %v467_v42  ;;  %v859_v33 = vpop.eup %858  ;;  %vm474_vm8 = vmor %vm472_vm14, %vm473_vm4 }
  0xcc   : > { %v479_v48 = vmul.f32 0.5, %v478_v58  ;;  %v508_v50 = vmul.f32 %v857_v27, %v507_v18  ;;  %v497_v26 = vmul.f32 %v859_v33, %v1352_v0  ;;  %vm514_vm10 = vmor %vm512_vm9, %vm513_vm6  ;;  %vm503_vm11 = vweird.f32 %v859_v33 }
  0xcd   : > { %v455_v13 = vsel %vm454_vm15, %v847_v37, %v451_v28  ;;  %v441_v51 = vmul.f32 %v849_v52, %v440_v43  ;;  %v490_v62 = vsub.f32 1.5, %v489_v44  ;;  %v469_v53 = vmul.f32 0.5, %v468_v2  ;;  %vm504_vm13 = vmor %vm502_vm12, %vm503_vm11 }
  0xce   : > { %v613_v59 = vmul.f32 %v455_v13, %v1013_v46  ;;  %v480_v29 = vsub.f32 1.5, %v479_v48  ;;  %v509_v23 = vmul.f32 0.5, %v508_v50  ;;  %v498_v30 = vmul.f32 %v859_v33, %v497_v26 }
  0xcf   : > { %v445_v35 = vsel %vm444_vm2, %v849_v52, %v441_v51  ;;  %v491_v11 = vmul.f32 %v851_v61, %v490_v62  ;;  %v470_v10 = vsub.f32 1.5, %v469_v53 }
  0xd0   : > { %v659_v25 = vpack.c.bf16 %v613_v59, %v613_v59  ;;  %v612_v36 = vmul.f32 %v445_v35, %v1016_v47  ;;  %v481_v46 = vmul.f32 %v853_v20, %v480_v29  ;;  %v510_v9 = vsub.f32 1.5, %v509_v23 }
  0xd1   : > { %v495_v49 = vsel %vm494_vm5, %v851_v61, %v491_v11  ;;  %v471_v8 = vmul.f32 %v855_v4, %v470_v10  ;;  %v499_v19 = vmul.f32 0.5, %v498_v30 }
  0xd2   : > { %683 = vst.msk [vmem:[%s1106_s17 + $0x3c] sm:$0xf] %vm667_vm7, %v659_v25  ;;  %v658_v60 = vpack.c.bf16 %v612_v36, %v612_v36  ;;  %v617_v47 = vmul.f32 %v495_v49, %v1028_v54  ;;  %v485_v12 = vsel %vm484_vm3, %v853_v20, %v481_v46  ;;  %v511_v6 = vmul.f32 %v857_v27, %v510_v9 }
  0xd3   : > { %v616_v37 = vmul.f32 %v485_v12, %v1031_v55  ;;  %v475_v39 = vsel %vm474_vm8, %v855_v4, %v471_v8  ;;  %v500_v21 = vsub.f32 1.5, %v499_v19 }
  0xd4   : > { %682 = vst.msk [vmem:[%s1106_s17 + $0x38] sm:$0xf] %vm667_vm7, %v658_v60  ;;  %v663_v15 = vpack.c.bf16 %v617_v47, %v617_v47  ;;  %v615_v55 = vmul.f32 %v475_v39, %v1034_v56  ;;  %v515_v7 = vsel %vm514_vm10, %v857_v27, %v511_v6 }
  0xd5   : > { %v662_v54 = vpack.c.bf16 %v616_v37, %v616_v37  ;;  %v619_v17 = vmul.f32 %v515_v7, %v1046_v63  ;;  %v501_v52 = vmul.f32 %v859_v33, %v500_v21 }
  0xd6   : > { %687 = vst.msk [vmem:[%s1106_s17 + $0x4c] sm:$0xf] %vm667_vm7, %v663_v15  ;;  %v661_v5 = vpack.c.bf16 %v615_v55, %v615_v55 }
  0xd7   : > { %686 = vst.msk [vmem:[%s1106_s17 + $0x48] sm:$0xf] %vm667_vm7, %v662_v54  ;;  %v665_v22 = vpack.c.bf16 %v619_v17, %v619_v17  ;;  %v505_v14 = vsel %vm504_vm13, %v859_v33, %v501_v52 }
  0xd8   : > { %685 = vst.msk [vmem:[%s1106_s17 + $0x44] sm:$0xf] %vm667_vm7, %v661_v5  ;;  %v618_v56 = vmul.f32 %v505_v14, %v1049_v3 }
  0xd9   : > { %689 = vst.msk [vmem:[%s1106_s17 + $0x54] sm:$0xf] %vm667_vm7, %v665_v22 }
  0xda   : > { %v664_v38 = vpack.c.bf16 %v618_v56, %v618_v56 }
  0xdc   : > { %688 = vst.msk [vmem:[%s1106_s17 + $0x50] sm:$0xf] %vm667_vm7, %v664_v38 }
  0xdd PF: > { %s11_s8 = sadd.s32 1, %s882_s8   ;;  %s1414_s6 = smov %s878_s7 }
  0xde   : > { %p8_p5 = scmp.ge.s32.totalorder %s11_s8, 4   ;;  %s1415_s7 = smov %s1417_s9 }
  0xe0   :  { %10 = sbr.rel (!%p8_p5) target bundleno = 2 (0x2), region = 54 }

</bundles_post_ra>
